<compile_context>
chip_gen: v7x
topology: tpu7x:2x2x1
jax: 0.10.0
libtpu: 0.0.40
codegen_flags: <defaults>
</compile_context>

<pallas_src>
import functools

import jax
import jax.numpy as jnp
from jax import lax
from jax.experimental import pallas as pl
from jax.experimental.pallas import tpu as pltpu

_LANE = 128
_FUSED_VMEM_BUDGET = 24 * 1024 * 1024   # conservative gate for the single-call path
_FUSED_VMEM_LIMIT = 40 * 1024 * 1024
_TILED_VMEM_LIMIT = 48 * 1024 * 1024


def _round_up(x, m):
    return ((x + m - 1) // m) * m


def _masked_softmax(logits, n_classes):
    # Softmax over dim=1 restricted to the valid (un-padded) class lanes; exact divide.
    col = lax.broadcasted_iota(jnp.int32, logits.shape, 1)
    valid = col < n_classes
    masked = jnp.where(valid, logits, -1e30)
    m = jnp.max(masked, axis=1, keepdims=True)
    e = jnp.where(valid, jnp.exp(masked - m), 0.0)
    return e / jnp.sum(e, axis=1, keepdims=True)


# ---------------------------------------------------------------------------
# Fused single-call kernel (A resident in VMEM): projection + k hops + softmax
# ---------------------------------------------------------------------------
def _fused_kernel(a_ref, x_ref, w_ref, norm_ref, inv_deg_ref,
                  probs_ref, logits_ref, *, k: int, n_classes: int):
    # h0 = (X @ W) * D^{-1/2}   (projection before propagation, pre-scaled for hop 1)
    h = jnp.dot(x_ref[...], w_ref[...], preferred_element_type=jnp.float32)
    h = h * norm_ref[...]
    a = a_ref[...]                               # bf16 0/1 adjacency, VMEM-resident
    for hop in range(k):                         # k is a static Python int (unrolled)
        ah = jnp.dot(a, h.astype(jnp.bfloat16), preferred_element_type=jnp.float32)
        scale = norm_ref[...] if hop == k - 1 else inv_deg_ref[...]
        h = ah * scale                           # fused D^{-1}/D^{-1/2} inter-hop scaling
    logits_ref[...] = h
    probs_ref[...] = _masked_softmax(h, n_classes)


# ---------------------------------------------------------------------------
# Tiled-path kernels
# ---------------------------------------------------------------------------
def _project_kernel(x_ref, w_ref, norm_ref, h_ref):
    # h0 = (X @ W) * D^{-1/2}, emitted in bf16 (operand dtype of the hop matmuls).
    h = jnp.dot(x_ref[...], w_ref[...], preferred_element_type=jnp.float32)
    h_ref[...] = (h * norm_ref[...]).astype(h_ref.dtype)


def _hop_kernel(a_ref, h_ref, scale_ref, out_ref, acc_ref, *, tk: int):
    # One intermediate hop: out = scale * (A @ H).  A is tiled over (row, reduction);
    # H is VMEM-resident (full array) and sliced here along the reduction axis.
    kk = pl.program_id(1)

    @pl.when(kk == 0)
    def _():
        acc_ref[...] = jnp.zeros_like(acc_ref)

    row0 = pl.multiple_of(kk * tk, tk)
    acc_ref[...] += jnp.dot(a_ref[...],                       # bf16 0/1 adjacency tile
                            h_ref[pl.ds(row0, tk), :],        # bf16 resident H slice
                            preferred_element_type=jnp.float32)

    @pl.when(kk == pl.num_programs(1) - 1)
    def _():
        out_ref[...] = (acc_ref[...] * scale_ref[...]).astype(out_ref.dtype)


def _final_hop_kernel(a_ref, h_ref, norm_ref, probs_ref, logits_ref, acc_ref,
                      *, tk: int, n_classes: int):
    # Last hop fused with the softmax head (class dim lane-padded to 128).
    kk = pl.program_id(1)

    @pl.when(kk == 0)
    def _():
        acc_ref[...] = jnp.zeros_like(acc_ref)

    row0 = pl.multiple_of(kk * tk, tk)
    acc_ref[...] += jnp.dot(a_ref[...],
                            h_ref[pl.ds(row0, tk), :],
                            preferred_element_type=jnp.float32)

    @pl.when(kk == pl.num_programs(1) - 1)
    def _():
        logits = acc_ref[...] * norm_ref[...]                 # (tm, c_pad) f32
        logits_ref[...] = logits
        probs_ref[...] = _masked_softmax(logits, n_classes)


# ---------------------------------------------------------------------------
# Wrapper
# ---------------------------------------------------------------------------
def gc_network_forward(adj, features, weight, *, k: int,
                       fused_vmem_budget: int = _FUSED_VMEM_BUDGET):
    """Returns (softmax(logits, axis=1), logits) like GCNetwork.forward (eval mode)."""
    assert k >= 1, "SGConv requires k >= 1 hops"
    n, f = features.shape
    c = weight.shape[1]
    assert adj.shape == (n, n) and weight.shape[0] == f

    c_pad = _round_up(c, _LANE)                   # lane-dense logits/probs stores

    # Conservative VMEM estimate for the fused path (inputs/outputs counted twice).
    n_pad_fused = _round_up(n, _LANE)
    fused_bytes = 2 * (2 * n_pad_fused * n_pad_fused          # A bf16
                       + 4 * n_pad_fused * f                  # X f32
                       + 4 * f * c_pad                        # W f32
                       + 2 * 4 * n_pad_fused * c_pad          # probs + logits f32
                       + 2 * 4 * n_pad_fused)                 # norm + inv_deg
    use_fused = fused_bytes <= fused_vmem_budget

    if use_fused:
        n_pad = n_pad_fused
        tm = tk = n_pad
    elif n <= 512:
        n_pad = _round_up(n, _LANE)
        tm = tk = n_pad                           # single full tile, lane-dense
    else:
        tm = tk = 512                             # large tiles amortize per-step overhead
        n_pad = _round_up(n, 512)

    # ---- padded inputs (no intermediate f32 N^2 array is materialized) ----
    adj_bf = (jnp.zeros((n_pad, n_pad), jnp.bfloat16)
              .at[:n, :n].set(adj.astype(jnp.bfloat16)))      # exact for 0/1 adjacency
    x_p = jnp.zeros((n_pad, f), jnp.float32).at[:n, :].set(features.astype(jnp.float32))
    w_p = jnp.zeros((f, c_pad), jnp.float32).at[:, :c].set(weight.astype(jnp.float32))

    # Degree normalization, computed once from the ORIGINAL adjacency.
    deg = jnp.maximum(jnp.sum(adj.astype(jnp.float32), axis=1, keepdims=True), 1.0)
    deg_p = jnp.ones((n_pad, 1), jnp.float32).at[:n, :].set(deg)
    norm = lax.rsqrt(deg_p)                                   # D^{-1/2}
    inv_deg = 1.0 / deg_p                                     # = norm * norm (fused)

    # ---------------- fused single-call path ----------------
    if use_fused:
        probs_p, logits_p = pl.pallas_call(
            functools.partial(_fused_kernel, k=k, n_classes=c),
            out_shape=(jax.ShapeDtypeStruct((n_pad, c_pad), jnp.float32),
                       jax.ShapeDtypeStruct((n_pad, c_pad), jnp.float32)),
            compiler_params=pltpu.CompilerParams(vmem_limit_bytes=_FUSED_VMEM_LIMIT),
        )(adj_bf, x_p, w_p, norm, inv_deg)
        return probs_p[:n, :c], logits_p[:n, :c]

    # ---------------- tiled multi-call path ----------------
    n_row = n_pad // tm
    n_red = n_pad // tk

    # Projection first: h0 = (X @ W) * norm, emitted in bf16.
    h = pl.pallas_call(
        _project_kernel,
        out_shape=jax.ShapeDtypeStruct((n_pad, c_pad), jnp.bfloat16),
        grid_spec=pltpu.PrefetchScalarGridSpec(
            num_scalar_prefetch=0,
            grid=(n_row,),
            in_specs=[
                pl.BlockSpec((tm, f), lambda i: (i, 0)),
                pl.BlockSpec((f, c_pad), lambda i: (0, 0)),
                pl.BlockSpec((tm, 1), lambda i: (i, 0)),
            ],
            out_specs=pl.BlockSpec((tm, c_pad), lambda i: (i, 0)),
        ),
        compiler_params=pltpu.CompilerParams(
            dimension_semantics=("parallel",), vmem_limit_bytes=_TILED_VMEM_LIMIT),
    )(x_p, w_p, norm)

    # Shared specs for the hop kernels.
    a_spec = pl.BlockSpec((tm, tk), lambda i, kk: (i, kk),
                          pipeline_mode=pl.Buffered(3))       # deeper buffering on A stream
    h_res_spec = pl.BlockSpec((n_pad, c_pad), lambda i, kk: (0, 0))   # VMEM-resident H
    row_spec = pl.BlockSpec((tm, 1), lambda i, kk: (i, 0))
    out_spec = pl.BlockSpec((tm, c_pad), lambda i, kk: (i, 0))
    hop_params = pltpu.CompilerParams(
        dimension_semantics=("parallel", "arbitrary"),
        vmem_limit_bytes=_TILED_VMEM_LIMIT)

    # k-1 intermediate hops: h = (1/deg) * (A @ h), output in bf16.
    for _ in range(k - 1):
        h = pl.pallas_call(
            functools.partial(_hop_kernel, tk=tk),
            out_shape=jax.ShapeDtypeStruct((n_pad, c_pad), jnp.bfloat16),
            grid_spec=pltpu.PrefetchScalarGridSpec(
                num_scalar_prefetch=0,
                grid=(n_row, n_red),
                in_specs=[a_spec, h_res_spec, row_spec],
                out_specs=out_spec,
                scratch_shapes=[pltpu.VMEM((tm, c_pad), jnp.float32)],
            ),
            compiler_params=hop_params,
        )(adj_bf, h, inv_deg)

    # Final hop fused with the softmax head.
    probs_p, logits_p = pl.pallas_call(
        functools.partial(_final_hop_kernel, tk=tk, n_classes=c),
        out_shape=(jax.ShapeDtypeStruct((n_pad, c_pad), jnp.float32),
                   jax.ShapeDtypeStruct((n_pad, c_pad), jnp.float32)),
        grid_spec=pltpu.PrefetchScalarGridSpec(
            num_scalar_prefetch=0,
            grid=(n_row, n_red),
            in_specs=[a_spec, h_res_spec, row_spec],
            out_specs=(out_spec, out_spec),
            scratch_shapes=[pltpu.VMEM((tm, c_pad), jnp.float32)],
        ),
        compiler_params=hop_params,
    )(adj_bf, h, norm)

    return probs_p[:n, :c], logits_p[:n, :c]


# ---------------------------------------------------------------------------
# Reference (pure JAX, f32, original propagate-then-project order)
# ---------------------------------------------------------------------------
def _reference(adj, features, weight, k):
    deg = jnp.maximum(jnp.sum(adj, axis=1, keepdims=True), 1.0)
    norm = 1.0 / jnp.sqrt(deg)
    h = features
    for _ in range(k):
        h = norm * (adj @ (norm * h))
    logits = h @ weight
    return jax.nn.softmax(logits, axis=1), logits


if __name__ == "__main__":
    K = 2
    keys = jax.random.split(jax.random.PRNGKey(0), 6)

    # ---- Path 1: tiny graph -> fully-fused single pallas_call ----
    N, IN_FEATS, N_CLASSES = 16, 8, 4
    adj = (jax.random.uniform(keys[0], (N, N)) < 0.25).astype(jnp.float32)
    features = jax.random.normal(keys[1], (N, IN_FEATS), dtype=jnp.float32)
    weight = (jax.random.normal(keys[2], (IN_FEATS, N_CLASSES), dtype=jnp.float32)
              * (1.0 / jnp.sqrt(IN_FEATS)))

    probs, logits = gc_network_forward(adj, features, weight, k=K)
    jax.block_until_ready((probs, logits))

    ref_probs, ref_logits = _reference(adj, features, weight, K)
    # Tolerances account for bf16 propagation operands (f32 accumulation) and the
    # mathematically-exact projection-first reordering (different f32 rounding).
    assert jnp.allclose(logits, ref_logits, atol=5e-2, rtol=5e-2)
    assert jnp.allclose(probs, ref_probs, atol=2e-2, rtol=2e-2)
    assert jnp.allclose(jnp.sum(probs, axis=1), 1.0, atol=1e-3)

    # ---- Path 2: force the tiled multi-call path (exercises grid / resident-H code) ----
    N2, F2, C2 = 640, 32, 7
    adj2 = (jax.random.uniform(keys[3], (N2, N2)) < 0.05).astype(jnp.float32)
    features2 = jax.random.normal(keys[4], (N2, F2), dtype=jnp.float32)
    weight2 = (jax.random.normal(keys[5], (F2, C2), dtype=jnp.float32)
               * (1.0 / jnp.sqrt(F2)))

    probs2, logits2 = gc_network_forward(adj2, features2, weight2, k=K,
                                         fused_vmem_budget=0)
    jax.block_until_ready((probs2, logits2))

    ref_probs2, ref_logits2 = _reference(adj2, features2, weight2, K)
    assert jnp.allclose(logits2, ref_logits2, atol=5e-2, rtol=5e-2)
    assert jnp.allclose(probs2, ref_probs2, atol=2e-2, rtol=2e-2)
    assert jnp.allclose(jnp.sum(probs2, axis=1), 1.0, atol=1e-3)

    print("KERNEL_OK")
</pallas_src>

<mosaic_0001>
module attributes {stable_mosaic.version = 11 : i64} {
  func.func @_fused_kernel(%arg0: memref<128x128xbf16, #tpu.memory_space<vmem>>, %arg1: memref<128x8xf32, #tpu.memory_space<vmem>>, %arg2: memref<8x128xf32, #tpu.memory_space<vmem>>, %arg3: memref<128x1xf32, #tpu.memory_space<vmem>>, %arg4: memref<128x1xf32, #tpu.memory_space<vmem>>, %arg5: memref<128x128xf32, #tpu.memory_space<vmem>>, %arg6: memref<128x128xf32, #tpu.memory_space<vmem>>) attributes {dimension_semantics = [], scalar_prefetch = 0 : i64, scratch_operands = 0 : i64, tpu.core_type = #tpu.core_type<tc>} {
    %c0 = arith.constant 0 : index
    %c0_0 = arith.constant 0 : index
    %0 = vector.load %arg1[%c0, %c0_0] : memref<128x8xf32, #tpu.memory_space<vmem>>, vector<128x8xf32>
    %c0_1 = arith.constant 0 : index
    %c0_2 = arith.constant 0 : index
    %1 = vector.load %arg2[%c0_1, %c0_2] : memref<8x128xf32, #tpu.memory_space<vmem>>, vector<8x128xf32>
    %cst = arith.constant dense<0.000000e+00> : vector<128x128xf32>
    %2 = tpu.matmul %0, %1, %cst {dimension_numbers = #tpu.dot_dimension_numbers<[1], [0], [0], [1], [0, 0, 1, 1], [], []>} : vector<128x8xf32>, vector<8x128xf32>, vector<128x128xf32> -> vector<128x128xf32>
    %c0_3 = arith.constant 0 : index
    %c0_4 = arith.constant 0 : index
    %3 = vector.load %arg3[%c0_3, %c0_4] : memref<128x1xf32, #tpu.memory_space<vmem>>, vector<128x1xf32>
    %4 = vector.broadcast %3 : vector<128x1xf32> to vector<128x128xf32>
    %5 = arith.mulf %2, %4 : vector<128x128xf32>
    %c0_5 = arith.constant 0 : index
    %c0_6 = arith.constant 0 : index
    %6 = vector.load %arg0[%c0_5, %c0_6] : memref<128x128xbf16, #tpu.memory_space<vmem>>, vector<128x128xbf16>
    %7 = arith.truncf %5 : vector<128x128xf32> to vector<128x128xbf16>
    %cst_7 = arith.constant dense<0.000000e+00> : vector<128x128xf32>
    %8 = tpu.matmul %6, %7, %cst_7 {dimension_numbers = #tpu.dot_dimension_numbers<[1], [0], [0], [1], [0, 0, 1, 1], [], []>} : vector<128x128xbf16>, vector<128x128xbf16>, vector<128x128xf32> -> vector<128x128xf32>
    %c0_8 = arith.constant 0 : index
    %c0_9 = arith.constant 0 : index
    %9 = vector.load %arg4[%c0_8, %c0_9] : memref<128x1xf32, #tpu.memory_space<vmem>>, vector<128x1xf32>
    %10 = vector.broadcast %9 : vector<128x1xf32> to vector<128x128xf32>
    %11 = arith.mulf %8, %10 : vector<128x128xf32>
    %12 = arith.truncf %11 : vector<128x128xf32> to vector<128x128xbf16>
    %cst_10 = arith.constant dense<0.000000e+00> : vector<128x128xf32>
    %13 = tpu.matmul %6, %12, %cst_10 {dimension_numbers = #tpu.dot_dimension_numbers<[1], [0], [0], [1], [0, 0, 1, 1], [], []>} : vector<128x128xbf16>, vector<128x128xbf16>, vector<128x128xf32> -> vector<128x128xf32>
    %c0_11 = arith.constant 0 : index
    %c0_12 = arith.constant 0 : index
    %14 = vector.load %arg3[%c0_11, %c0_12] : memref<128x1xf32, #tpu.memory_space<vmem>>, vector<128x1xf32>
    %15 = vector.broadcast %14 : vector<128x1xf32> to vector<128x128xf32>
    %16 = arith.mulf %13, %15 : vector<128x128xf32>
    %c0_13 = arith.constant 0 : index
    %c0_14 = arith.constant 0 : index
    %17 = vector.load %arg6[%c0_13, %c0_14] : memref<128x128xf32, #tpu.memory_space<vmem>>, vector<128x128xf32>
    tpu.vector_store %arg6[%c0_13, %c0_14], %16 {strides = array<i32>} : memref<128x128xf32, #tpu.memory_space<vmem>>, vector<128x128xf32>,
    %18 = tpu.iota {dimensions = array<i32: 1>} : vector<128x128xi32>
    %c4_i32 = arith.constant 4 : i32
    %19 = vector.broadcast %c4_i32 : i32 to vector<128x128xi32>
    %20 = arith.cmpi slt, %18, %19 : vector<128x128xi32>
    %cst_15 = arith.constant -1.000000e+30 : f32
    %21 = vector.broadcast %cst_15 : f32 to vector<128x128xf32>
    %22 = arith.select %20, %16, %21 : vector<128x128xi1>, vector<128x128xf32>
    %cst_16 = arith.constant dense<0xFF800000> : vector<128xf32>
    %23 = vector.multi_reduction <maximumf>, %22, %cst_16 [1] : vector<128x128xf32> to vector<128xf32>
    %24 = vector.shape_cast %23 : vector<128xf32> to vector<128x1xf32>
    %25 = vector.broadcast %24 : vector<128x1xf32> to vector<128x128xf32>
    %26 = arith.subf %22, %25 : vector<128x128xf32>
    %27 = math.exp %26 : vector<128x128xf32>
    %cst_17 = arith.constant 0.000000e+00 : f32
    %28 = vector.broadcast %cst_17 : f32 to vector<128x128xf32>
    %29 = arith.select %20, %27, %28 : vector<128x128xi1>, vector<128x128xf32>
    %cst_18 = arith.constant dense<0.000000e+00> : vector<128xf32>
    %30 = vector.multi_reduction <add>, %29, %cst_18 [1] : vector<128x128xf32> to vector<128xf32>
    %31 = vector.shape_cast %30 : vector<128xf32> to vector<128x1xf32>
    %32 = vector.broadcast %31 : vector<128x1xf32> to vector<128x128xf32>
    %33 = arith.divf %29, %32 : vector<128x128xf32>
    %c0_19 = arith.constant 0 : index
    %c0_20 = arith.constant 0 : index
    %34 = vector.load %arg5[%c0_19, %c0_20] : memref<128x128xf32, #tpu.memory_space<vmem>>, vector<128x128xf32>
    tpu.vector_store %arg5[%c0_19, %c0_20], %33 {strides = array<i32>} : memref<128x128xf32, #tpu.memory_space<vmem>>, vector<128x128xf32>,
    return
  }
}

</mosaic_0001>

<bundles_post_ra>
// kernel: tpu_custom_call.1
= control target key start
LH: loop header
LB: loop body
LE: loop exit
PB: predicated region body
PF: predicated region fallthrough
CT: control target
= control target key end

     0   :  { %12 = vsyncpa [#allocation3], 0  ;;  %vm42_vm0 = vcmask 64512   ;;  %v1283_v4 = vmov 0   ;;  %s1827_s0 = inlined_call_operand.vmem [shape: bf16[128,128], index: 0, kind: input, shape index: {}]   ;;  %s1828_s1 = inlined_call_operand.vmem [shape: f32[128,8], index: 1, kind: input, shape index: {}]   ;;  %s1829_s2 = inlined_call_operand.vmem [shape: f32[8,128], index: 2, kind: input, shape index: {}]   ;;  %s1830_s3 = inlined_call_operand.vmem [shape: f32[128,1], index: 3, kind: input, shape index: {}]   ;;  %s1831_s4 = inlined_call_operand.vmem [shape: f32[128,1], index: 4, kind: input, shape index: {}]   ;;  %s1832_s5 = inlined_call_operand.hbm [shape: f32[128,128], index: 5, kind: output, shape index: {0}]   ;;  %s1833_s6 = inlined_call_operand.hbm [shape: f32[128,128], index: 6, kind: output, shape index: {1}]  }
   0x1   :  { %v41_v0 = vld [vmem:[%s1829_s2] sm:$0xff]  ;;  %v26_v2 = vld [vmem:[%s1828_s1 + $0x8] sm:$0xff]  ;;  %v27_v3 = vld [vmem:[%s1828_s1 + $0x10] sm:$0xff]  ;;  %1161 = vset.pattern.permute.xlu0 %v1283_v4  ;;  %1162 = vset.pattern.permute.xlu1 %v1283_v4 }
   0x2   :  { %v25_v1 = vld [vmem:[%s1828_s1] sm:$0xff]  ;;  %1066 = vmatprep.subr.mxu0 %v41_v0  ;;  %v28_v5 = vld [vmem:[%s1828_s1 + $0x18] sm:$0xff]  ;;  %v238_v8 = vld [vmem:[%s1830_s3 + $0x10] sm:$0xff] }
   0x3   :  { %1068 = vmatprep.mubr.msk.f32.mxu0 %vm42_vm0, %v25_v1  ;;  %1067 = vmatpush3.msra.mxu0 %v41_v0  ;;  %v236_v6 = vld [vmem:[%s1830_s3] sm:$0xff]  ;;  %v237_v9 = vld [vmem:[%s1830_s3 + $0x8] sm:$0xff]  ;;  %v239_v10 = vld [vmem:[%s1830_s3 + $0x18] sm:$0xff] }
   0x4   :  { %1069 = vmatmul.mubr.msk.f32.vlgmr.msra.gmra.mrb[0].mxu0 %vm42_vm0, %v26_v2  ;;  %v29_v7 = vld [vmem:[%s1828_s1 + $0x20] sm:$0xff]  ;;  %254 = vperm.xlu0 %1161, %v236_v6   ;;  %v30_v11 = vld [vmem:[%s1828_s1 + $0x28] sm:$0xff]  ;;  %v31_v12 = vld [vmem:[%s1828_s1 + $0x30] sm:$0xff] }
   0x5   :  { %1071 = vmatprep.mubr.msk.f32.mxu0 %vm42_vm0, %v27_v3  ;;  %264 = vperm.xlu1 %1162, %v238_v8   ;;  %v240_v13 = vld [vmem:[%s1830_s3 + $0x20] sm:$0xff]  ;;  %v241_v14 = vld [vmem:[%s1830_s3 + $0x28] sm:$0xff]  ;;  %v32_v15 = vld [vmem:[%s1828_s1 + $0x38] sm:$0xff] }
   0x6   :  { %v33_v16 = vld [vmem:[%s1828_s1 + $0x40] sm:$0xff]  ;;  %v242_v17 = vld [vmem:[%s1830_s3 + $0x30] sm:$0xff]  ;;  %v34_v18 = vld [vmem:[%s1828_s1 + $0x48] sm:$0xff] }
   0x7   :  { %v35_v19 = vld [vmem:[%s1828_s1 + $0x50] sm:$0xff]  ;;  %v243_v20 = vld [vmem:[%s1830_s3 + $0x38] sm:$0xff]  ;;  %v244_v21 = vld [vmem:[%s1830_s3 + $0x40] sm:$0xff] }
   0x8   :  { %1072 = vmatmul.mubr.msk.f32.gmra.mrb[2].mxu0 %vm42_vm0, %v28_v5  ;;  %259 = vperm.xlu0 %1161, %v237_v9   ;;  %v245_v22 = vld [vmem:[%s1830_s3 + $0x48] sm:$0xff]  ;;  %v36_v23 = vld [vmem:[%s1828_s1 + $0x58] sm:$0xff]  ;;  %v37_v24 = vld [vmem:[%s1828_s1 + $0x60] sm:$0xff] }
   0x9   :  { %1074 = vmatprep.mubr.msk.f32.mxu0 %vm42_vm0, %v29_v7  ;;  %269 = vperm.xlu1 %1162, %v239_v10  }
   0xc   :  { %1075 = vmatmul.mubr.msk.f32.gmra.mrb[4].mxu0 %vm42_vm0, %v30_v11  ;;  %274 = vperm.xlu0 %1161, %v240_v13  }
   0xd   :  { %1077 = vmatprep.mubr.msk.f32.mxu0 %vm42_vm0, %v31_v12  ;;  %279 = vperm.xlu1 %1162, %v241_v14  }
  0x10   :  { %1078 = vmatmul.mubr.msk.f32.gmra.mrb[6].mxu0 %vm42_vm0, %v32_v15  ;;  %284 = vperm.xlu0 %1161, %v242_v17  }
  0x11   :  { %1080 = vmatprep.mubr.msk.f32.mxu0 %vm42_vm0, %v33_v16  ;;  %289 = vperm.xlu1 %1162, %v243_v20  }
  0x14   :  { %1081 = vmatmul.mubr.msk.f32.gmra.mrb[8].mxu0 %vm42_vm0, %v34_v18  ;;  %294 = vperm.xlu0 %1161, %v244_v21  }
  0x15   :  { %1083 = vmatprep.mubr.msk.f32.mxu0 %vm42_vm0, %v35_v19 }
  0x16   :  { %13 = vsyncpa [#allocation5], 0  ;;  %299 = vperm.xlu1 %1162, %v245_v22   ;;  %v246_v25 = vld [vmem:[%s1830_s3 + $0x50] sm:$0xff]  ;;  %v247_v26 = vld [vmem:[%s1830_s3 + $0x58] sm:$0xff] }
  0x17   :  { %v38_v27 = vld [vmem:[%s1828_s1 + $0x68] sm:$0xff]  ;;  %v39_v28 = vld [vmem:[%s1828_s1 + $0x70] sm:$0xff]  ;;  %v248_v29 = vld [vmem:[%s1830_s3 + $0x60] sm:$0xff] }
  0x18   :  { %1084 = vmatmul.mubr.msk.f32.gmra.mrb[10].mxu0 %vm42_vm0, %v36_v23  ;;  %304 = vperm.xlu0 %1161, %v246_v25   ;;  %v249_v30 = vld [vmem:[%s1830_s3 + $0x68] sm:$0xff]  ;;  %v40_v31 = vld [vmem:[%s1828_s1 + $0x78] sm:$0xff]  ;;  %v250_v32 = vld [vmem:[%s1830_s3 + $0x70] sm:$0xff] }
  0x19   :  { %1086 = vmatprep.mubr.msk.f32.mxu0 %vm42_vm0, %v37_v24  ;;  %v251_v33 = vld [vmem:[%s1830_s3 + $0x78] sm:$0xff]  ;;  %v517_v34 = vld [vmem:[%s1831_s4] sm:$0xff]  ;;  %v518_v35 = vld [vmem:[%s1831_s4 + $0x8] sm:$0xff] }
  0x1a   :  { %309 = vperm.xlu1 %1162, %v247_v26   ;;  %v519_v36 = vld [vmem:[%s1831_s4 + $0x10] sm:$0xff]  ;;  %v520_v37 = vld [vmem:[%s1831_s4 + $0x18] sm:$0xff]  ;;  %v521_v38 = vld [vmem:[%s1831_s4 + $0x20] sm:$0xff] }
  0x1b   :  { %v522_v39 = vld [vmem:[%s1831_s4 + $0x28] sm:$0xff]  ;;  %v523_v40 = vld [vmem:[%s1831_s4 + $0x30] sm:$0xff]  ;;  %v524_v41 = vld [vmem:[%s1831_s4 + $0x38] sm:$0xff] }
  0x1c   :  { %1087 = vmatmul.mubr.msk.f32.gmra.mrb[12].mxu0 %vm42_vm0, %v38_v27  ;;  %314 = vperm.xlu0 %1161, %v248_v29   ;;  %v525_v42 = vld [vmem:[%s1831_s4 + $0x40] sm:$0xff]  ;;  %v526_v43 = vld [vmem:[%s1831_s4 + $0x48] sm:$0xff]  ;;  %v527_v44 = vld [vmem:[%s1831_s4 + $0x50] sm:$0xff] }
  0x1d   :  { %1089 = vmatprep.mubr.msk.f32.mxu0 %vm42_vm0, %v39_v28  ;;  %v528_v45 = vld [vmem:[%s1831_s4 + $0x58] sm:$0xff]  ;;  %v529_v46 = vld [vmem:[%s1831_s4 + $0x60] sm:$0xff]  ;;  %v530_v47 = vld [vmem:[%s1831_s4 + $0x68] sm:$0xff] }
  0x1e   :  { %319 = vperm.xlu1 %1162, %v249_v30   ;;  %v531_v48 = vld [vmem:[%s1831_s4 + $0x70] sm:$0xff]  ;;  %v532_v49 = vld [vmem:[%s1831_s4 + $0x78] sm:$0xff]  ;;  %v1163_v50 = vld [vmem:[%s1827_s0] sm:$0xff]  }
  0x1f   :  { %1108 = vmatprep.mubr.bf16.mxu1 %v1163_v50 }
  0x20   :  { %1090 = vmatmul.mubr.msk.f32.gmra.mrb[14].mxu0 %vm42_vm0, %v40_v31  ;;  %324 = vperm.xlu0 %1161, %v250_v32  }
  0x21   :  { %1140 = vmatprep.mubr.bf16.mxu0 %v1163_v50 }
  0x22   :  { %329 = vperm.xlu1 %1162, %v251_v33  }
  0x24   :  { %535 = vperm.xlu0 %1161, %v517_v34  }
  0x26   :  { %540 = vperm.xlu1 %1162, %v518_v35  }
  0x28   :  { %545 = vperm.xlu0 %1161, %v519_v36  }
  0x2a   :  { %550 = vperm.xlu1 %1162, %v520_v37  }
  0x2c   :  { %555 = vperm.xlu0 %1161, %v521_v38  }
  0x2e   :  { %560 = vperm.xlu1 %1162, %v522_v39  }
  0x30   :  { %565 = vperm.xlu0 %1161, %v523_v40  }
  0x32   :  { %570 = vperm.xlu1 %1162, %v524_v41  }
  0x34   :  { %575 = vperm.xlu0 %1161, %v525_v42  }
  0x36   :  { %580 = vperm.xlu1 %1162, %v526_v43   ;;  %v1540_v43 = vld [vmem:[%s1827_s0 + $0x8] sm:$0xff]  }
  0x38   :  { %585 = vperm.xlu0 %1161, %v527_v44   ;;  %v1545_v44 = vld [vmem:[%s1827_s0 + $0x10] sm:$0xff]  }
  0x3a   :  { %590 = vperm.xlu1 %1162, %v528_v45   ;;  %v1552_v45 = vld [vmem:[%s1827_s0 + $0x18] sm:$0xff]  }
  0x3c   :  { %595 = vperm.xlu0 %1161, %v529_v46   ;;  %v1557_v46 = vld [vmem:[%s1827_s0 + $0x20] sm:$0xff]  }
  0x3e   :  { %600 = vperm.xlu1 %1162, %v530_v47   ;;  %v1564_v47 = vld [vmem:[%s1827_s0 + $0x28] sm:$0xff]  }
  0x40   :  { %605 = vperm.xlu0 %1161, %v531_v48   ;;  %v1569_v48 = vld [vmem:[%s1827_s0 + $0x30] sm:$0xff]  }
  0x42   :  { %610 = vperm.xlu1 %1162, %v532_v49   ;;  %v1576_v49 = vld [vmem:[%s1827_s0 + $0x38] sm:$0xff]   ;;  %s1284_s0 = smov [#allocation4]  }
  0x43   :  { %s978_s29 = sshll.u32 %s1284_s0, 4  ;;  %s979_s29 = int_to_ptr.vmem [resolvable:$true] %s978_s29 }
  0x44   :  { %s1235_s30 = scalar_lea.vmem %s979_s29, 2048  ;;  %p1240_p1 = scmp.lt.s32.totalorder %s979_s29, %s979_s29 }
  0x45   :  { %p1236_p0 = scmp.ne.s32.totalorder %s979_s29, %s1235_s30  ;;  %p1241_p2 = scmp.lt.s32.totalorder %s1235_s30, %s1235_s30 }
  0x47   :  { %p1242_p3 = por %p1241_p2, %p1240_p1 }
  0x49   :  { %p1243_p4 = pnand %p1242_p3, %p1236_p0 }
  0x83   :  { %v1491_v52 = vpop.permute.xlu0 %254 }
  0x84   :  { %v1489_v51 = vpop.permute.xlu1 %264 }
  0x87   :  { %v1495_v54 = vpop.permute.xlu0 %259 }
  0x88   :  { %v1493_v53 = vpop.permute.xlu1 %269 }
  0x8b   :  { %v1499_v56 = vpop.permute.xlu0 %274 }
  0x8c   :  { %v1497_v55 = vpop.permute.xlu1 %279 }
  0x8f   :  { %v1505_v0 = vpop.permute.xlu0 %284 }
  0x90   :  { %v1503_v61 = vpop.permute.xlu1 %289 }
  0x93   :  { %v1513_v10 = vpop.permute.xlu0 %294 }
  0x95   :  { %v1510_v8 = vpop.permute.xlu1 %299 }
  0x97   :  { %v1519_v19 = vpop.permute.xlu0 %304 }
  0x99   :  { %v1517_v16 = vpop.permute.xlu1 %309 }
  0x9b   :  { %v1527_v29 = vpop.permute.xlu0 %314 }
  0x9d   :  { %v1524_v27 = vpop.permute.xlu1 %319 }
  0x9f   :  { %v1533_v38 = vpop.permute.xlu0 %324 }
  0xa1   :  { %v1531_v35 = vpop.permute.xlu1 %329 }
  0xa3   :  { %v536_v50 = vpop.permute.xlu0 %535 }
  0xd7   :  { %v1070_v57 = vpop.f32.mrb[0].mxu0 }
  0xd8   :  { %v333_v58 = vmul.f32 %v1070_v57, %v1495_v54  ;;  %v157_v59 = vpop.f32.mrb[1].mxu0  ;;  %v541_v57 = vpop.permute.xlu1 %540 }
  0xd9   :  { %v332_v60 = vmul.f32 %v1491_v52, %v157_v59 }
  0xdb   :  { %v1073_v62 = vpop.f32.mrb[2].mxu0  ;;  %v364_v63 = vpack.c.bf16 %v333_v58, %v332_v60  ;;  %v546_v58 = vpop.permute.xlu0 %545 }
  0xdc   :  { %v335_v1 = vmul.f32 %v1073_v62, %v1493_v53  ;;  %v167_v2 = vpop.f32.mrb[3].mxu0  ;;  %v551_v59 = vpop.permute.xlu1 %550 }
  0xdd   :  { %v334_v3 = vmul.f32 %v1489_v51, %v167_v2  ;;  %1092 = vmatprep.subr.bf16.mxu1 %v364_v63 }
  0xde   :  { %1093 = vmatpush3.bf16.msra.mxu1 %v364_v63 }
  0xdf   :  { %v365_v4 = vpack.c.bf16 %v335_v1, %v334_v3  ;;  %v1076_v5 = vpop.f32.mrb[4].mxu0  ;;  %v556_v60 = vpop.permute.xlu0 %555 }
  0xe0   :  { %v337_v6 = vmul.f32 %v1076_v5, %v1497_v55  ;;  %v177_v7 = vpop.f32.mrb[5].mxu0  ;;  %v561_v62 = vpop.permute.xlu1 %560 }
  0xe1   :  { %v336_v9 = vmul.f32 %v1499_v56, %v177_v7  ;;  %1094 = vmatprep.subr.bf16.mxu1 %v365_v4 }
  0xe2   :  { %1095 = vmatpush3.bf16.msra.mxu1 %v365_v4 }
  0xe3   :  { %v366_v11 = vpack.c.bf16 %v337_v6, %v336_v9  ;;  %v1079_v12 = vpop.f32.mrb[6].mxu0  ;;  %v566_v1 = vpop.permute.xlu0 %565 }
  0xe4   :  { %v339_v13 = vmul.f32 %v1079_v12, %v1503_v61  ;;  %v187_v14 = vpop.f32.mrb[7].mxu0  ;;  %v571_v3 = vpop.permute.xlu1 %570 }
  0xe5   :  { %v338_v15 = vmul.f32 %v1505_v0, %v187_v14  ;;  %1096 = vmatprep.subr.bf16.mxu1 %v366_v11 }
  0xe6   :  { %1097 = vmatpush3.bf16.msra.mxu1 %v366_v11 }
  0xe7   :  { %v367_v17 = vpack.c.bf16 %v339_v13, %v338_v15  ;;  %v1082_v18 = vpop.f32.mrb[8].mxu0  ;;  %v576_v14 = vpop.permute.xlu0 %575 }
  0xe8   :  { %v341_v20 = vmul.f32 %v1082_v18, %v1510_v8  ;;  %v197_v21 = vpop.f32.mrb[9].mxu0  ;;  %v581_v15 = vpop.permute.xlu1 %580 }
  0xe9   :  { %v340_v22 = vmul.f32 %v1513_v10, %v197_v21  ;;  %1098 = vmatprep.subr.bf16.mxu1 %v367_v17 }
  0xea   :  { %1099 = vmatpush3.bf16.msra.mxu1 %v367_v17 }
  0xeb   :  { %v368_v23 = vpack.c.bf16 %v341_v20, %v340_v22  ;;  %v1085_v24 = vpop.f32.mrb[10].mxu0 }
  0xec   :  { %v343_v25 = vmul.f32 %v1085_v24, %v1517_v16  ;;  %v207_v26 = vpop.f32.mrb[11].mxu0 }
  0xed   :  { %v342_v28 = vmul.f32 %v1519_v19, %v207_v26  ;;  %1100 = vmatprep.subr.bf16.mxu1 %v368_v23  ;;  %v586_v26 = vpop.permute.xlu0 %585 }
  0xee   :  { %1101 = vmatpush3.bf16.msra.mxu1 %v368_v23 }
  0xef   :  { %v369_v30 = vpack.c.bf16 %v343_v25, %v342_v28  ;;  %v1088_v31 = vpop.f32.mrb[12].mxu0 }
  0xf0   :  { %v345_v32 = vmul.f32 %v1088_v31, %v1524_v27  ;;  %v217_v33 = vpop.f32.mrb[13].mxu0 }
  0xf1   :  { %v344_v34 = vmul.f32 %v1527_v29, %v217_v33  ;;  %1102 = vmatprep.subr.bf16.mxu1 %v369_v30 }
  0xf2   :  { %1103 = vmatpush3.bf16.msra.mxu1 %v369_v30  ;;  %v591_v30 = vpop.permute.xlu1 %590 }
  0xf3   :  { %v370_v36 = vpack.c.bf16 %v345_v32, %v344_v34  ;;  %v1091_v37 = vpop.f32.mrb[14].mxu0 }
  0xf4   :  { %v347_v39 = vmul.f32 %v1091_v37, %v1531_v35  ;;  %v227_v40 = vpop.f32.mrb[15].mxu0 }
  0xf5   :  { %v346_v41 = vmul.f32 %v1533_v38, %v227_v40  ;;  %1104 = vmatprep.subr.bf16.mxu1 %v370_v36 }
  0xf6   :  { %1105 = vmatpush3.bf16.msra.mxu1 %v370_v36  ;;  %v596_v36 = vpop.permute.xlu0 %595 }
  0xf7   :  { %v371_v42 = vpack.c.bf16 %v347_v39, %v346_v41  ;;  %v601_v41 = vpop.permute.xlu1 %600 }
  0xf9   :  { %1106 = vmatprep.subr.bf16.mxu1 %v371_v42 }
  0xfa   :  { %1107 = vmatpush3.bf16.msra.mxu1 %v371_v42 }
  0xfd   :  { %1109 = vmatmul.mubr.bf16.vlgmr.msra.gmra.mrb[0].mxu1 %v1540_v43 }
  0xfe   :  { %1112 = vmatprep.mubr.bf16.mxu1 %v1545_v44 }
 0x105   :  { %1113 = vmatmul.mubr.bf16.gmra.mrb[4].mxu1 %v1552_v45 }
 0x106   :  { %1116 = vmatprep.mubr.bf16.mxu1 %v1557_v46 }
 0x10d   :  { %1117 = vmatmul.mubr.bf16.gmra.mrb[8].mxu1 %v1564_v47 }
 0x10e   :  { %1120 = vmatprep.mubr.bf16.mxu1 %v1569_v48 }
 0x115   :  { %1121 = vmatmul.mubr.bf16.gmra.mrb[12].mxu1 %v1576_v49 }
 0x1d0   :  { %v1110_v63 = vpop.f32.mrb[0].mxu1 }
 0x1d1   :  { %v454_v2 = vpop.f32.mrb[1].mxu1  ;;  %v615_v5 = vmul.f32 %v1110_v63, %v546_v58  ;;  %v611_v63 = vpop.permute.xlu1 %610 }
 0x1d2   :  { %v1111_v4 = vpop.f32.mrb[2].mxu1  ;;  %v613_v9 = vmul.f32 %v536_v50, %v454_v2 }
 0x1d3   :  { %v616_v6 = vmul.f32 %v1111_v4, %v551_v59  ;;  %v457_v7 = vpop.f32.mrb[3].mxu1 }
 0x1d4   :  { %v614_v11 = vmul.f32 %v541_v57, %v457_v7 }
 0x1d5   :  { %v630_v12 = vpack.c.bf16 %v616_v6, %v615_v5 }
 0x1d6   :  { %v629_v13 = vpack.c.bf16 %v614_v11, %v613_v9  ;;  %v766_v11 = vlaneseq }
 0x1d8   :  { %v1114_v17 = vpop.f32.mrb[4].mxu1  ;;  %1124 = vmatprep.subr.bf16.mxu0 %v629_v13 }
 0x1d9   :  { %v470_v18 = vpop.f32.mrb[5].mxu1  ;;  %1125 = vmatpush3.bf16.msra.mxu0 %v629_v13  ;;  %v619_v21 = vmul.f32 %v1114_v17, %v566_v1 }
 0x1da   :  { %v1115_v20 = vpop.f32.mrb[6].mxu1  ;;  %1126 = vmatprep.subr.bf16.mxu0 %v630_v12  ;;  %v617_v24 = vmul.f32 %v556_v60, %v470_v18  ;;  %v606_v60 = vpop.permute.xlu0 %605 }
 0x1db   :  { %v620_v22 = vmul.f32 %v1115_v20, %v571_v3  ;;  %v473_v23 = vpop.f32.mrb[7].mxu1 }
 0x1dc   :  { %v618_v25 = vmul.f32 %v561_v62, %v473_v23 }
 0x1dd   :  { %v632_v28 = vpack.c.bf16 %v620_v22, %v619_v21  ;;  %1127 = vmatpush3.bf16.msra.mxu0 %v630_v12  ;;  %v1586_v12 = vand.u32 127, %v766_v11 }
 0x1de   :  { %v631_v31 = vpack.c.bf16 %v618_v25, %v617_v24 }
 0x1df   :  { %vm768_vm1 = vcmp.lt.s32.totalorder %v1586_v12, 4 }
 0x1e0   :  { %v1118_v32 = vpop.f32.mrb[8].mxu1  ;;  %1128 = vmatprep.subr.bf16.mxu0 %v631_v31 }
 0x1e1   :  { %v486_v33 = vpop.f32.mrb[9].mxu1  ;;  %1129 = vmatpush3.bf16.msra.mxu0 %v631_v31  ;;  %v623_v37 = vmul.f32 %v1118_v32, %v586_v26 }
 0x1e2   :  { %v1119_v34 = vpop.f32.mrb[10].mxu1  ;;  %1130 = vmatprep.subr.bf16.mxu0 %v632_v28  ;;  %v621_v42 = vmul.f32 %v576_v14, %v486_v33 }
 0x1e3   :  { %v624_v39 = vmul.f32 %v1119_v34, %v591_v30  ;;  %v489_v40 = vpop.f32.mrb[11].mxu1 }
 0x1e4   :  { %v622_v50 = vmul.f32 %v581_v15, %v489_v40 }
 0x1e5   :  { %v634_v57 = vpack.c.bf16 %v624_v39, %v623_v37  ;;  %1131 = vmatpush3.bf16.msra.mxu0 %v632_v28 }
 0x1e6   :  { %v633_v58 = vpack.c.bf16 %v622_v50, %v621_v42 }
 0x1e8   :  { %v1122_v59 = vpop.f32.mrb[12].mxu1  ;;  %1132 = vmatprep.subr.bf16.mxu0 %v633_v58 }
 0x1e9   :  { %v502_v62 = vpop.f32.mrb[13].mxu1  ;;  %1133 = vmatpush3.bf16.msra.mxu0 %v633_v58  ;;  %v627_v2 = vmul.f32 %v1122_v59, %v606_v60 }
 0x1ea   :  { %v1123_v1 = vpop.f32.mrb[14].mxu1  ;;  %1134 = vmatprep.subr.bf16.mxu0 %v634_v57  ;;  %v625_v5 = vmul.f32 %v596_v36, %v502_v62 }
 0x1eb   :  { %v628_v3 = vmul.f32 %v1123_v1, %v611_v63  ;;  %v505_v4 = vpop.f32.mrb[15].mxu1 }
 0x1ec   :  { %v626_v6 = vmul.f32 %v601_v41, %v505_v4 }
 0x1ed   :  { %v636_v7 = vpack.c.bf16 %v628_v3, %v627_v2  ;;  %1135 = vmatpush3.bf16.msra.mxu0 %v634_v57 }
 0x1ee   :  { %v635_v9 = vpack.c.bf16 %v626_v6, %v625_v5 }
 0x1f0   :  { %1136 = vmatprep.subr.bf16.mxu0 %v635_v9 }
 0x1f1   :  { %1137 = vmatpush3.bf16.msra.mxu0 %v635_v9 }
 0x1f2   :  { %1138 = vmatprep.subr.bf16.mxu0 %v636_v7 }
 0x1f5   :  { %1139 = vmatpush3.bf16.msra.mxu0 %v636_v7 }
 0x1f8   :  { %1141 = vmatmul.mubr.bf16.vlgmr.msra.gmra.mrb[16].mxu0 %v1540_v43 }
 0x1f9   :  { %1144 = vmatprep.mubr.bf16.mxu0 %v1545_v44 }
 0x200   :  { %1145 = vmatmul.mubr.bf16.gmra.mrb[20].mxu0 %v1552_v45 }
 0x201   :  { %1148 = vmatprep.mubr.bf16.mxu0 %v1557_v46 }
 0x208   :  { %1149 = vmatmul.mubr.bf16.gmra.mrb[24].mxu0 %v1564_v47 }
 0x209   :  { %1152 = vmatprep.mubr.bf16.mxu0 %v1569_v48 }
 0x210   :  { %1153 = vmatmul.mubr.bf16.gmra.mrb[28].mxu0 %v1576_v49 }
 0x2cb   :  { %v1142_v13 = vpop.f32.mrb[16].mxu0 }
 0x2cc   :  { %v736_v43 = vmul.f32 %v1142_v13, %v1489_v51  ;;  %v671_v14 = vpop.f32.mrb[17].mxu0 }
 0x2cd   :  { %v734_v44 = vmul.f32 %v671_v14, %v1491_v52  ;;  %v1143_v45 = vpop.f32.mrb[18].mxu0 }
 0x2ce   :  { %752 = vst [vmem:[#allocation4 + $0x10] sm:$0xff] %v736_v43  ;;  %v737_v46 = vmul.f32 %v1143_v45, %v1493_v53  ;;  %v674_v47 = vpop.f32.mrb[19].mxu0  ;;  %v1594_v48 = vsel %vm768_vm1, %v736_v43, -1e+30 }
 0x2cf   :  { %750 = vst [vmem:[#allocation4] sm:$0xff] %v734_v44  ;;  %v735_v49 = vmul.f32 %v674_v47, %v1495_v54  ;;  %789 = vmax.xlane.f32.xlu0 %v1594_v48  ;;  %v1605_v52 = vsel %vm768_vm1, %v734_v44, -1e+30 }
 0x2d0   :  { %753 = vst [vmem:[#allocation4 + $0x18] sm:$0xff] %v737_v46  ;;  %v1613_v22 = vsel %vm768_vm1, %v737_v46, -1e+30 }
 0x2d1   :  { %751 = vst [vmem:[#allocation4 + $0x8] sm:$0xff] %v735_v49  ;;  %v1600_v51 = vsel %vm768_vm1, %v735_v49, -1e+30 }
 0x2d2   :  { %787 = vmax.xlane.f32.xlu1 %v1600_v51 }
 0x2d3   :  { %785 = vmax.xlane.f32.xlu0 %v1605_v52  ;;  %v1146_v53 = vpop.f32.mrb[20].mxu0 }
 0x2d4   :  { %v740_v15 = vmul.f32 %v1146_v53, %v1505_v0  ;;  %v687_v54 = vpop.f32.mrb[21].mxu0 }
 0x2d5   :  { %v738_v17 = vmul.f32 %v687_v54, %v1499_v56  ;;  %v1147_v18 = vpop.f32.mrb[22].mxu0 }
 0x2d6   :  { %756 = vst [vmem:[#allocation4 + $0x30] sm:$0xff] %v740_v15  ;;  %v741_v20 = vmul.f32 %v1147_v18, %v1503_v61  ;;  %v690_v21 = vpop.f32.mrb[23].mxu0  ;;  %v1617_v23 = vsel %vm768_vm1, %v740_v15, -1e+30 }
 0x2d7   :  { %754 = vst [vmem:[#allocation4 + $0x20] sm:$0xff] %v738_v17  ;;  %v739_v24 = vmul.f32 %v690_v21, %v1497_v55  ;;  %791 = vmax.xlane.f32.xlu0 %v1613_v22  ;;  %797 = vmax.xlane.f32.xlu1 %v1617_v23  ;;  %v1624_v56 = vsel %vm768_vm1, %v738_v17, -1e+30 }
 0x2d8   :  { %757 = vst [vmem:[#allocation4 + $0x38] sm:$0xff] %v741_v20  ;;  %v1628_v61 = vsel %vm768_vm1, %v741_v20, -1e+30 }
 0x2d9   :  { %755 = vst [vmem:[#allocation4 + $0x28] sm:$0xff] %v739_v24  ;;  %v1637_v32 = vsel %vm768_vm1, %v739_v24, -1e+30 }
 0x2db   :  { %793 = vmax.xlane.f32.xlu1 %v1624_v56  ;;  %799 = vmax.xlane.f32.xlu0 %v1628_v61  ;;  %v1150_v0 = vpop.f32.mrb[24].mxu0 }
 0x2dc   :  { %v744_v55 = vmul.f32 %v1150_v0, %v1519_v19  ;;  %v703_v25 = vpop.f32.mrb[25].mxu0 }
 0x2dd   :  { %v742_v26 = vmul.f32 %v703_v25, %v1513_v10  ;;  %v1151_v28 = vpop.f32.mrb[26].mxu0 }
 0x2de   :  { %760 = vst [vmem:[#allocation4 + $0x50] sm:$0xff] %v744_v55  ;;  %v745_v30 = vmul.f32 %v1151_v28, %v1517_v16  ;;  %v706_v31 = vpop.f32.mrb[27].mxu0  ;;  %v1641_v33 = vsel %vm768_vm1, %v744_v55, -1e+30 }
 0x2df   :  { %758 = vst [vmem:[#allocation4 + $0x40] sm:$0xff] %v742_v26  ;;  %v743_v34 = vmul.f32 %v706_v31, %v1510_v8  ;;  %795 = vmax.xlane.f32.xlu0 %v1637_v32  ;;  %805 = vmax.xlane.f32.xlu1 %v1641_v33  ;;  %v1648_v10 = vsel %vm768_vm1, %v742_v26, -1e+30 }
 0x2e0   :  { %761 = vst [vmem:[#allocation4 + $0x58] sm:$0xff] %v745_v30  ;;  %v1652_v16 = vsel %vm768_vm1, %v745_v30, -1e+30 }
 0x2e1   :  { %759 = vst [vmem:[#allocation4 + $0x48] sm:$0xff] %v743_v34  ;;  %v1661_v42 = vsel %vm768_vm1, %v743_v34, -1e+30 }
 0x2e3   :  { %801 = vmax.xlane.f32.xlu1 %v1648_v10  ;;  %807 = vmax.xlane.f32.xlu0 %v1652_v16  ;;  %v1154_v19 = vpop.f32.mrb[28].mxu0 }
 0x2e4   :  { %v748_v8 = vmul.f32 %v1154_v19, %v1533_v38  ;;  %v719_v36 = vpop.f32.mrb[29].mxu0 }
 0x2e5   :  { %v746_v37 = vmul.f32 %v719_v36, %v1527_v29  ;;  %v1155_v39 = vpop.f32.mrb[30].mxu0 }
 0x2e6   :  { %764 = vst [vmem:[#allocation4 + $0x70] sm:$0xff] %v748_v8  ;;  %v749_v40 = vmul.f32 %v1155_v39, %v1531_v35  ;;  %v722_v41 = vpop.f32.mrb[31].mxu0  ;;  %v1677_v35 = vsel %vm768_vm1, %v748_v8, -1e+30 }
 0x2e7   :  { %762 = vst [vmem:[#allocation4 + $0x60] sm:$0xff] %v746_v37  ;;  %v747_v50 = vmul.f32 %v722_v41, %v1524_v27  ;;  %803 = vmax.xlane.f32.xlu0 %v1661_v42  ;;  %v1667_v38 = vsel %vm768_vm1, %v746_v37, -1e+30 }
 0x2e8   :  { %765 = vst [vmem:[#allocation4 + $0x78] sm:$0xff] %v749_v40  ;;  %809 = vmax.xlane.f32.xlu1 %v1667_v38  ;;  %v1682_v27 = vsel %vm768_vm1, %v749_v40, -1e+30 }
 0x2e9   :  { %763 = vst [vmem:[#allocation4 + $0x68] sm:$0xff] %v747_v50  ;;  %v1672_v29 = vsel %vm768_vm1, %v747_v50, -1e+30 }
 0x2eb   :  { %811 = vmax.xlane.f32.xlu0 %v1672_v29 }
 0x2ec   :  { %813 = vmax.xlane.f32.xlu1 %v1677_v35 }
 0x2ef   :  { %815 = vmax.xlane.f32.xlu0 %v1682_v27 }
 0x35c   :  { %v790_v57 = vpop.xlane.xlu0 %789 }
 0x35d   :  { %v819_v58 = vsub.f32 %v1594_v48, %v790_v57 }
 0x35f   :  { %v837_v59 = vmul.f32 1.442695, %v819_v58  ;;  %v788_v60 = vpop.xlane.xlu1 %787 }
 0x360   :  { %v786_v62 = vpop.xlane.xlu0 %785  ;;  %v818_v1 = vsub.f32 %v1600_v51, %v788_v60 }
 0x361   :  { %1171 = vpow2.f32 %v837_v59  ;;  %v817_v63 = vsub.f32 %v1605_v52, %v786_v62 }
 0x362   :  { %v835_v7 = vmul.f32 1.442695, %v818_v1 }
 0x363   :  { %v833_v2 = vmul.f32 1.442695, %v817_v63 }
 0x364   :  { %v792_v3 = vpop.xlane.xlu0 %791  ;;  %v798_v4 = vpop.xlane.xlu1 %797 }
 0x365   :  { %1173 = vpow2.f32 %v833_v2  ;;  %v820_v5 = vsub.f32 %v1613_v22, %v792_v3  ;;  %v823_v6 = vsub.f32 %v1617_v23, %v798_v4 }
 0x367   :  { %v839_v9 = vmul.f32 1.442695, %v820_v5  ;;  %v845_v11 = vmul.f32 1.442695, %v823_v6 }
 0x368   :  { %v794_v13 = vpop.xlane.xlu1 %793  ;;  %v800_v43 = vpop.xlane.xlu0 %799 }
 0x369   :  { %1175 = vpow2.f32 %v839_v9  ;;  %v821_v14 = vsub.f32 %v1624_v56, %v794_v13  ;;  %v824_v44 = vsub.f32 %v1628_v61, %v800_v43 }
 0x36a   :  { %1177 = vpow2.f32 %v845_v11 }
 0x36b   :  { %v1172_v45 = vpop.eup %1171  ;;  %1179 = vpow2.f32 %v835_v7  ;;  %v841_v46 = vmul.f32 1.442695, %v821_v14  ;;  %v847_v47 = vmul.f32 1.442695, %v824_v44 }
 0x36c   :  { %v796_v48 = vpop.xlane.xlu0 %795  ;;  %v806_v49 = vpop.xlane.xlu1 %805  ;;  %v1694_v51 = vsel %vm768_vm1, %v1172_v45, 0.0 }
 0x36d   :  { %1181 = vpow2.f32 %v841_v46  ;;  %v822_v52 = vsub.f32 %v1637_v32, %v796_v48  ;;  %v827_v53 = vsub.f32 %v1641_v33, %v806_v49  ;;  %885 = vadd.xlane.f32.xlu1 %v1694_v51 }
 0x36e   :  { %1183 = vpow2.f32 %v847_v47 }
 0x36f   :  { %v1174_v15 = vpop.eup %1173  ;;  %v843_v54 = vmul.f32 1.442695, %v822_v52  ;;  %v853_v17 = vmul.f32 1.442695, %v827_v53 }
 0x370   :  { %v802_v18 = vpop.xlane.xlu1 %801  ;;  %v808_v20 = vpop.xlane.xlu0 %807  ;;  %v1701_v21 = vsel %vm768_vm1, %v1174_v15, 0.0 }
 0x371   :  { %v825_v22 = vsub.f32 %v1648_v10, %v802_v18  ;;  %v828_v23 = vsub.f32 %v1652_v16, %v808_v20  ;;  %881 = vadd.xlane.f32.xlu1 %v1701_v21  ;;  %1185 = vpow2.f32 %v853_v17 }
 0x372   :  { %1187 = vpow2.f32 %v843_v54 }
 0x373   :  { %v1176_v24 = vpop.eup %1175  ;;  %v849_v56 = vmul.f32 1.442695, %v825_v22  ;;  %v855_v61 = vmul.f32 1.442695, %v828_v23 }
 0x374   :  { %v1178_v0 = vpop.eup %1177  ;;  %v804_v55 = vpop.xlane.xlu0 %803  ;;  %v1708_v25 = vsel %vm768_vm1, %v1176_v24, 0.0 }
 0x375   :  { %v1180_v26 = vpop.eup %1179  ;;  %1189 = vpow2.f32 %v849_v56  ;;  %v826_v28 = vsub.f32 %v1661_v42, %v804_v55  ;;  %v1713_v30 = vsel %vm768_vm1, %v1178_v0, 0.0  ;;  %v810_v31 = vpop.xlane.xlu1 %809  ;;  %887 = vadd.xlane.f32.xlu0 %v1708_v25 }
 0x376   :  { %893 = vadd.xlane.f32.xlu1 %v1713_v30  ;;  %v829_v32 = vsub.f32 %v1667_v38, %v810_v31  ;;  %1191 = vpow2.f32 %v855_v61  ;;  %v1724_v8 = vsel %vm768_vm1, %v1180_v26, 0.0 }
 0x377   :  { %v1182_v33 = vpop.eup %1181  ;;  %v851_v34 = vmul.f32 1.442695, %v826_v28 }
 0x378   :  { %v857_v10 = vmul.f32 1.442695, %v829_v32  ;;  %v812_v16 = vpop.xlane.xlu0 %811  ;;  %v1720_v19 = vsel %vm768_vm1, %v1182_v33, 0.0  ;;  %v1184_v36 = vpop.eup %1183 }
 0x379   :  { %v830_v37 = vsub.f32 %v1672_v29, %v812_v16  ;;  %v814_v39 = vpop.xlane.xlu1 %813  ;;  %883 = vadd.xlane.f32.xlu0 %v1724_v8  ;;  %v1732_v57 = vsel %vm768_vm1, %v1184_v36, 0.0 }
 0x37a   :  { %1193 = vpow2.f32 %v857_v10  ;;  %889 = vadd.xlane.f32.xlu1 %v1720_v19  ;;  %v831_v40 = vsub.f32 %v1677_v35, %v814_v39 }
 0x37b   :  { %1195 = vpow2.f32 %v851_v34  ;;  %v859_v41 = vmul.f32 1.442695, %v830_v37  ;;  %v1186_v42 = vpop.eup %1185 }
 0x37c   :  { %v861_v50 = vmul.f32 1.442695, %v831_v40  ;;  %v816_v38 = vpop.xlane.xlu0 %815  ;;  %v1188_v58 = vpop.eup %1187  ;;  %v1737_v59 = vsel %vm768_vm1, %v1186_v42, 0.0 }
 0x37d   :  { %v832_v29 = vsub.f32 %v1682_v27, %v816_v38  ;;  %895 = vadd.xlane.f32.xlu0 %v1732_v57  ;;  %v1747_v63 = vsel %vm768_vm1, %v1188_v58, 0.0 }
 0x37e   :  { %1197 = vpow2.f32 %v861_v50  ;;  %901 = vadd.xlane.f32.xlu1 %v1737_v59 }
 0x37f   :  { %v1190_v35 = vpop.eup %1189  ;;  %1199 = vpow2.f32 %v859_v41  ;;  %v863_v60 = vmul.f32 1.442695, %v832_v29 }
 0x380   :  { %v1743_v62 = vsel %vm768_vm1, %v1190_v35, 0.0  ;;  %v1192_v27 = vpop.eup %1191 }
 0x381   :  { %891 = vadd.xlane.f32.xlu0 %v1747_v63  ;;  %1201 = vpow2.f32 %v863_v60  ;;  %v1753_v2 = vsel %vm768_vm1, %v1192_v27, 0.0 }
 0x382   :  { %897 = vadd.xlane.f32.xlu1 %v1743_v62 }
 0x384   :  { %v1194_v1 = vpop.eup %1193 }
 0x385   :  { %v1196_v3 = vpop.eup %1195  ;;  %903 = vadd.xlane.f32.xlu0 %v1753_v2  ;;  %v1758_v4 = vsel %vm768_vm1, %v1194_v1, 0.0 }
 0x386   :  { %905 = vadd.xlane.f32.xlu1 %v1758_v4  ;;  %v1763_v6 = vsel %vm768_vm1, %v1196_v3, 0.0 }
 0x388   :  { %v1198_v5 = vpop.eup %1197 }
 0x389   :  { %v1200_v7 = vpop.eup %1199  ;;  %899 = vadd.xlane.f32.xlu0 %v1763_v6  ;;  %v1768_v9 = vsel %vm768_vm1, %v1198_v5, 0.0 }
 0x38a   :  { %909 = vadd.xlane.f32.xlu1 %v1768_v9  ;;  %v1773_v11 = vsel %vm768_vm1, %v1200_v7, 0.0 }
 0x38b   :  { %v1202_v13 = vpop.eup %1201 }
 0x38c   :  { %v1778_v43 = vsel %vm768_vm1, %v1202_v13, 0.0 }
 0x38d   :  { %907 = vadd.xlane.f32.xlu0 %v1773_v11 }
 0x391   :  { %911 = vadd.xlane.f32.xlu0 %v1778_v43 }
 0x392   :  { %1246 = shalt.err (!%p1243_p4)
}
 0x393   :  { %s1247_s9 = scalar_lea.hbm %s1833_s6, 2048 }
 0x394   :  { %p1248_p5 = scmp.ne.s32.totalorder %s1833_s6, %s1247_s9  ;;  %p1251_p6 = scmp.lt.u32.totalorder %s1247_s9, %s1833_s6 }
 0x396   :  { %p1253_p7 = pnand %p1251_p6, %p1248_p5 }
 0x398   :  { %1256 = shalt.err (!%p1253_p7)
}
 0x399   :  { %s1285_s14 = smov 128   ;;  %s1286_s1 = smov 8  }
 0x39a   :  { %984 = dma.vmem_to_hbm [thread:$0]  %s979_s29, 2048, %s1833_s6, [#allocation5], %s1285_s14, %s1285_s14, %s1286_s1  }
 0x39b   :  { %s1287_s6 = smov [#allocation2]  }
 0x39c   :  { %s966_s17 = sshll.u32 %s1287_s6, 4  ;;  %s967_s17 = int_to_ptr.vmem [resolvable:$true] %s966_s17 }
 0x39d   :  { %s1257_s4 = scalar_lea.vmem %s967_s17, 2048  ;;  %p1262_p9 = scmp.lt.s32.totalorder %s967_s17, %s967_s17 }
 0x39e   :  { %p1258_p8 = scmp.ne.s32.totalorder %s967_s17, %s1257_s4  ;;  %p1263_p10 = scmp.lt.s32.totalorder %s1257_s4, %s1257_s4 }
 0x3a0   :  { %p1264_p11 = por %p1263_p10, %p1262_p9 }
 0x3a2   :  { %p1265_p12 = pnand %p1264_p11, %p1258_p8 }
 0x3fa   :  { %v886_v12 = vpop.xlane.xlu1 %885 }
 0x3fb   :  { %1203 = vrcp.f32 %v886_v12 }
 0x3fe   :  { %v882_v14 = vpop.xlane.xlu1 %881 }
 0x3ff   :  { %1205 = vrcp.f32 %v882_v14 }
 0x402   :  { %v888_v44 = vpop.xlane.xlu0 %887 }
 0x403   :  { %v894_v45 = vpop.xlane.xlu1 %893  ;;  %1207 = vrcp.f32 %v888_v44 }
 0x404   :  { %1209 = vrcp.f32 %v894_v45 }
 0x405   :  { %v1204_v46 = vpop.eup %1203 }
 0x406   :  { %v918_v47 = vmul.f32 %v1204_v46, %v1694_v51  ;;  %v884_v48 = vpop.xlane.xlu0 %883 }
 0x407   :  { %v890_v49 = vpop.xlane.xlu1 %889  ;;  %1211 = vrcp.f32 %v884_v48 }
 0x408   :  { %947 = vst [vmem:[#allocation2 + $0x10] sm:$0xff] %v918_v47  ;;  %1213 = vrcp.f32 %v890_v49 }
 0x409   :  { %v1206_v52 = vpop.eup %1205 }
 0x40a   :  { %v914_v53 = vmul.f32 %v1206_v52, %v1701_v21  ;;  %v896_v15 = vpop.xlane.xlu0 %895 }
 0x40b   :  { %v902_v54 = vpop.xlane.xlu1 %901  ;;  %1215 = vrcp.f32 %v896_v15 }
 0x40c   :  { %945 = vst [vmem:[#allocation2] sm:$0xff] %v914_v53  ;;  %1217 = vrcp.f32 %v902_v54 }
 0x40d   :  { %v1208_v17 = vpop.eup %1207 }
 0x40e   :  { %v1210_v18 = vpop.eup %1209  ;;  %v920_v20 = vmul.f32 %v1208_v17, %v1708_v25  ;;  %v892_v22 = vpop.xlane.xlu0 %891 }
 0x40f   :  { %v926_v51 = vmul.f32 %v1210_v18, %v1713_v30  ;;  %v898_v23 = vpop.xlane.xlu1 %897  ;;  %1219 = vrcp.f32 %v892_v22 }
 0x410   :  { %948 = vst [vmem:[#allocation2 + $0x18] sm:$0xff] %v920_v20  ;;  %1221 = vrcp.f32 %v898_v23 }
 0x411   :  { %v1212_v24 = vpop.eup %1211  ;;  %951 = vst [vmem:[#allocation2 + $0x30] sm:$0xff] %v926_v51 }
 0x412   :  { %v1214_v56 = vpop.eup %1213  ;;  %v916_v21 = vmul.f32 %v1212_v24, %v1724_v8  ;;  %v904_v61 = vpop.xlane.xlu0 %903 }
 0x413   :  { %v922_v0 = vmul.f32 %v1214_v56, %v1720_v19  ;;  %1223 = vrcp.f32 %v904_v61  ;;  %v906_v55 = vpop.xlane.xlu1 %905 }
 0x414   :  { %946 = vst [vmem:[#allocation2 + $0x8] sm:$0xff] %v916_v21  ;;  %1225 = vrcp.f32 %v906_v55 }
 0x415   :  { %v1216_v25 = vpop.eup %1215  ;;  %949 = vst [vmem:[#allocation2 + $0x20] sm:$0xff] %v922_v0 }
 0x416   :  { %v1218_v26 = vpop.eup %1217  ;;  %v928_v28 = vmul.f32 %v1216_v25, %v1732_v57  ;;  %v900_v30 = vpop.xlane.xlu0 %899 }
 0x417   :  { %v934_v31 = vmul.f32 %v1218_v26, %v1737_v59  ;;  %1227 = vrcp.f32 %v900_v30  ;;  %v910_v32 = vpop.xlane.xlu1 %909 }
 0x418   :  { %952 = vst [vmem:[#allocation2 + $0x38] sm:$0xff] %v928_v28  ;;  %1229 = vrcp.f32 %v910_v32 }
 0x419   :  { %v1220_v33 = vpop.eup %1219  ;;  %955 = vst [vmem:[#allocation2 + $0x50] sm:$0xff] %v934_v31 }
 0x41a   :  { %v1222_v34 = vpop.eup %1221  ;;  %v924_v10 = vmul.f32 %v1220_v33, %v1747_v63  ;;  %v908_v16 = vpop.xlane.xlu0 %907 }
 0x41b   :  { %v930_v19 = vmul.f32 %v1222_v34, %v1743_v62  ;;  %1231 = vrcp.f32 %v908_v16 }
 0x41c   :  { %950 = vst [vmem:[#allocation2 + $0x28] sm:$0xff] %v924_v10 }
 0x41d   :  { %v1224_v8 = vpop.eup %1223  ;;  %953 = vst [vmem:[#allocation2 + $0x40] sm:$0xff] %v930_v19 }
 0x41e   :  { %v1226_v36 = vpop.eup %1225  ;;  %v936_v37 = vmul.f32 %v1224_v8, %v1753_v2  ;;  %v912_v39 = vpop.xlane.xlu0 %911 }
 0x41f   :  { %v938_v40 = vmul.f32 %v1226_v36, %v1758_v4  ;;  %1233 = vrcp.f32 %v912_v39 }
 0x420   :  { %956 = vst [vmem:[#allocation2 + $0x58] sm:$0xff] %v936_v37 }
 0x421   :  { %v1228_v41 = vpop.eup %1227  ;;  %957 = vst [vmem:[#allocation2 + $0x60] sm:$0xff] %v938_v40 }
 0x422   :  { %v1230_v42 = vpop.eup %1229  ;;  %v932_v50 = vmul.f32 %v1228_v41, %v1763_v6 }
 0x423   :  { %v942_v38 = vmul.f32 %v1230_v42, %v1768_v9 }
 0x424   :  { %954 = vst [vmem:[#allocation2 + $0x48] sm:$0xff] %v932_v50 }
 0x425   :  { %v1232_v57 = vpop.eup %1231  ;;  %959 = vst [vmem:[#allocation2 + $0x70] sm:$0xff] %v942_v38 }
 0x426   :  { %v940_v58 = vmul.f32 %v1232_v57, %v1773_v11 }
 0x428   :  { %958 = vst [vmem:[#allocation2 + $0x68] sm:$0xff] %v940_v58 }
 0x429   :  { %v1234_v29 = vpop.eup %1233 }
 0x42a   :  { %v944_v59 = vmul.f32 %v1234_v29, %v1778_v43 }
 0x42c   :  { %960 = vst [vmem:[#allocation2 + $0x78] sm:$0xff] %v944_v59 }
 0x42d   :  { %1268 = shalt.err (!%p1265_p12)
}
 0x42e   :  { %s1269_s19 = scalar_lea.hbm %s1832_s5, 2048 }
 0x42f   :  { %p1270_p13 = scmp.ne.s32.totalorder %s1832_s5, %s1269_s19  ;;  %p1273_p0 = scmp.lt.u32.totalorder %s1269_s19, %s1832_s5 }
 0x431   :  { %p1275_p1 = pnand %p1273_p0, %p1270_p13 }
 0x433   :  { %1278 = shalt.err (!%p1275_p1)
}
 0x434   :  { %972 = dma.vmem_to_hbm [thread:$0]  %s967_s17, 2048, %s1832_s5, [#allocation3], %s1285_s14, %s1285_s14, %s1286_s1  }
 0x435   :  { %1279 = dma.done.wait [#allocation3], 2048  }
 0x436   :  { %1280 = vsyncadd [#allocation3], 4294965248 }
 0x437   :  { %1281 = dma.done.wait [#allocation5], 2048  }
 0x438   :  { %1282 = vsyncadd [#allocation5], 4294965248 }
 0x439   :  { %991 = vsyncpa [#allocation3], 1 }
 0x43a   :  { %992 = vsyncpa [#allocation5], 1 }

</bundles_post_ra>
